<compile_context>
chip_gen: v7x
topology: tpu7x:2x2x1
jax: 0.10.0
libtpu: 0.0.40
codegen_flags: <defaults>
</compile_context>

<pallas_src>
import jax
import jax.numpy as jnp
from jax.experimental import pallas as pl
from jax.experimental.pallas import tpu as pltpu

LANE = 128
SUBLANE = 8
_NEG_BIG = -1e30          # bias for padded logit lanes -> exp underflows to exactly 0

MIN_TILE_ROWS = 1024      # below this, per-grid-step overhead dominates
TARGET_GRID_STEPS = 8     # ~4 steps per TensorCore on dual-core v7x


def _round_up(x, m):
    return ((x + m - 1) // m) * m


def actor_dis_kernel(x_ref,
                     w1_ref, b1_ref,
                     w2_ref, b2_ref,
                     w3_ref, b3_ref,
                     w4_ref, b4_ref,
                     out_ref):
    """One batch tile: 4 matmuls (bf16 operands -> MXU, f32 accumulate) + ReLU + softmax."""
    x = x_ref[...].astype(jnp.bfloat16)

    h = jnp.dot(x, w1_ref[...], preferred_element_type=jnp.float32) + b1_ref[...]
    h = jnp.maximum(h, 0.0).astype(jnp.bfloat16)

    h = jnp.dot(h, w2_ref[...], preferred_element_type=jnp.float32) + b2_ref[...]
    h = jnp.maximum(h, 0.0).astype(jnp.bfloat16)

    h = jnp.dot(h, w3_ref[...], preferred_element_type=jnp.float32) + b3_ref[...]
    h = jnp.maximum(h, 0.0).astype(jnp.bfloat16)

    # dropout(p=0.1) -> identity in eval mode.
    logits = jnp.dot(h, w4_ref[...], preferred_element_type=jnp.float32) + b4_ref[...]

    # Padded logit lanes carry a -1e30 bias (zero weights), so exp underflows to
    # exactly 0: they perturb neither the row max nor the denominator, and the
    # lane-dense 128-wide reductions stay cheap.
    m = jnp.max(logits, axis=1, keepdims=True)
    e = jnp.exp(logits - m)
    denom = jnp.sum(e, axis=1, keepdims=True)
    probs = e / denom                      # exact divide: rows sum to 1 at f32 precision

    # Store only the real out_dim columns (out_ref last dim == full output dim).
    out_ref[...] = probs[:, :out_ref.shape[1]].astype(out_ref.dtype)


def actor_dis_forward(state, params, out_dim, *, tile_b=2048):
    """state: [B, input_dim] f32; params: padded/bf16 params from prepare_params."""
    B, d_in = state.shape
    out_pad = params["w4"].shape[1]
    assert out_dim <= out_pad

    # Batch tile: big enough to amortize per-step overhead, small enough that the
    # batch splits into ~TARGET_GRID_STEPS steps (so v7x's two TCs both get work),
    # and never larger than the (sublane-aligned) batch itself.
    b_aligned = _round_up(B, SUBLANE)
    tb = min(tile_b,
             max(MIN_TILE_ROWS, _round_up(pl.cdiv(B, TARGET_GRID_STEPS), SUBLANE)),
             b_aligned)
    grid = (pl.cdiv(B, tb),)   # partial last block handled by Pallas (masked store)

    # Constant block index => weights/biases DMA'd once, VMEM-resident across the grid.
    def resident(arr):
        return pl.BlockSpec(arr.shape, lambda i: (0, 0))

    return pl.pallas_call(
        actor_dis_kernel,
        out_shape=jax.ShapeDtypeStruct((B, out_dim), jnp.float32),
        grid=grid,
        in_specs=[
            pl.BlockSpec((tb, d_in), lambda i: (i, 0)),  # state tile (pipelined)
            resident(params["w1"]), resident(params["b1"]),
            resident(params["w2"]), resident(params["b2"]),
            resident(params["w3"]), resident(params["b3"]),
            resident(params["w4"]), resident(params["b4"]),
        ],
        out_specs=pl.BlockSpec((tb, out_dim), lambda i: (i, 0)),
        compiler_params=pltpu.CompilerParams(
            dimension_semantics=("parallel",)),
    )(state,
      params["w1"], params["b1"],
      params["w2"], params["b2"],
      params["w3"], params["b3"],
      params["w4"], params["b4"])


def init_params(key, input_dim, output_dim):
    """PyTorch-style uniform init; weights stored as (in, out), f32, logical shapes."""
    dims = [(input_dim, 64), (64, 128), (128, 256), (256, output_dim)]
    params = {}
    for i, (din, dout) in enumerate(dims, start=1):
        key, kw, kb = jax.random.split(key, 3)
        bound = 1.0 / jnp.sqrt(jnp.float32(din))
        params[f"w{i}"] = jax.random.uniform(kw, (din, dout), jnp.float32, -bound, bound)
        params[f"b{i}"] = jax.random.uniform(kb, (1, dout), jnp.float32, -bound, bound)
    return params


def prepare_params(raw):
    """Pad sub-128 widths to 128 lanes and cast weights to bf16 for the MXU.

    Hidden-layer padding is zero (ReLU(0 + 0) = 0 feeds zero rows downstream, so
    the math is unchanged).  Output padding uses a -1e30 bias so padded logits
    vanish under softmax (and are never stored anyway).
    """
    def pad_w(w, rows, cols):
        return jnp.pad(w, ((0, rows - w.shape[0]), (0, cols - w.shape[1])))

    def pad_b(b, cols, fill=0.0):
        return jnp.pad(b, ((0, 0), (0, cols - b.shape[1])), constant_values=fill)

    d_in = raw["w1"].shape[0]
    h1 = _round_up(raw["w1"].shape[1], LANE)       # 64  -> 128
    h2 = _round_up(raw["w2"].shape[1], LANE)       # 128 -> 128
    h3 = _round_up(raw["w3"].shape[1], LANE)       # 256 -> 256
    out_pad = _round_up(raw["w4"].shape[1], LANE)  # e.g. 8 -> 128

    return {
        "w1": pad_w(raw["w1"], d_in, h1).astype(jnp.bfloat16),
        "b1": pad_b(raw["b1"], h1),
        "w2": pad_w(raw["w2"], h1, h2).astype(jnp.bfloat16),
        "b2": pad_b(raw["b2"], h2),
        "w3": pad_w(raw["w3"], h2, h3).astype(jnp.bfloat16),
        "b3": pad_b(raw["b3"], h3),
        "w4": pad_w(raw["w4"], h3, out_pad).astype(jnp.bfloat16),
        "b4": pad_b(raw["b4"], out_pad, fill=_NEG_BIG),
    }


def reference_forward(state, params, out_dim):
    """Pure-JAX f32 reference using the same (padded, bf16-stored) parameters."""
    w = lambda k: params[k].astype(jnp.float32)
    x = jnp.maximum(state @ w("w1") + params["b1"], 0.0)
    x = jnp.maximum(x @ w("w2") + params["b2"], 0.0)
    x = jnp.maximum(x @ w("w3") + params["b3"], 0.0)
    logits = x @ w("w4") + params["b4"]
    return jax.nn.softmax(logits, axis=1)[:, :out_dim]


if __name__ == "__main__":
    key = jax.random.PRNGKey(0)
    key, k_state = jax.random.split(key)

    batch, input_dim, output_dim = 2, 16, 8
    state = jax.random.normal(k_state, (batch, input_dim), jnp.float32)

    raw_params = init_params(key, input_dim, output_dim)
    params = prepare_params(raw_params)

    probs = actor_dis_forward(state, params, output_dim)
    probs = jax.block_until_ready(probs)

    ref = reference_forward(state, params, output_dim)

    assert probs.shape == (batch, output_dim)
    # Exact divide in the kernel -> rows sum to 1 at f32 precision.
    assert jnp.allclose(jnp.sum(probs, axis=1), 1.0, atol=1e-4), jnp.sum(probs, axis=1)
    # bf16 matmul operands vs the f32 reference -> probabilities agree to ~1e-2.
    assert jnp.allclose(probs, ref, atol=2e-2, rtol=0.0), float(jnp.abs(probs - ref).max())

    print("KERNEL_OK")
</pallas_src>

<mosaic_0001>
module attributes {stable_mosaic.version = 11 : i64} {
  func.func @actor_dis_kernel(%arg0: i32, %arg1: memref<8x16xf32, #tpu.memory_space<vmem>>, %arg2: memref<16x128xbf16, #tpu.memory_space<vmem>>, %arg3: memref<1x128xf32, #tpu.memory_space<vmem>>, %arg4: memref<128x128xbf16, #tpu.memory_space<vmem>>, %arg5: memref<1x128xf32, #tpu.memory_space<vmem>>, %arg6: memref<128x256xbf16, #tpu.memory_space<vmem>>, %arg7: memref<1x256xf32, #tpu.memory_space<vmem>>, %arg8: memref<256x128xbf16, #tpu.memory_space<vmem>>, %arg9: memref<1x128xf32, #tpu.memory_space<vmem>>, %arg10: memref<8x8xf32, #tpu.memory_space<vmem>>) attributes {dimension_semantics = [#tpu.dimension_semantics<parallel>], iteration_bounds = array<i64: 1>, scalar_prefetch = 0 : i64, scratch_operands = 0 : i64, tpu.core_type = #tpu.core_type<tc>, window_params = [{transform_indices = @transform_0, window_bounds = array<i64: 8, 16>}, {pipeline_mode = #tpu.pipeline_mode<synchronous>, transform_indices = @transform_1, window_bounds = array<i64: 16, 128>}, {pipeline_mode = #tpu.pipeline_mode<synchronous>, transform_indices = @transform_2, window_bounds = array<i64: 1, 128>}, {pipeline_mode = #tpu.pipeline_mode<synchronous>, transform_indices = @transform_3, window_bounds = array<i64: 128, 128>}, {pipeline_mode = #tpu.pipeline_mode<synchronous>, transform_indices = @transform_4, window_bounds = array<i64: 1, 128>}, {pipeline_mode = #tpu.pipeline_mode<synchronous>, transform_indices = @transform_5, window_bounds = array<i64: 128, 256>}, {pipeline_mode = #tpu.pipeline_mode<synchronous>, transform_indices = @transform_6, window_bounds = array<i64: 1, 256>}, {pipeline_mode = #tpu.pipeline_mode<synchronous>, transform_indices = @transform_7, window_bounds = array<i64: 256, 128>}, {pipeline_mode = #tpu.pipeline_mode<synchronous>, transform_indices = @transform_8, window_bounds = array<i64: 1, 128>}, {transform_indices = @transform_9, window_bounds = array<i64: 8, 8>}]} {
    %c0 = arith.constant 0 : index
    %c0_0 = arith.constant 0 : index
    %0 = vector.load %arg1[%c0, %c0_0] : memref<8x16xf32, #tpu.memory_space<vmem>>, vector<8x16xf32>
    %1 = arith.truncf %0 : vector<8x16xf32> to vector<8x16xbf16>
    %c0_1 = arith.constant 0 : index
    %c0_2 = arith.constant 0 : index
    %2 = vector.load %arg2[%c0_1, %c0_2] : memref<16x128xbf16, #tpu.memory_space<vmem>>, vector<16x128xbf16>
    %cst = arith.constant dense<0.000000e+00> : vector<8x128xf32>
    %3 = tpu.matmul %1, %2, %cst {dimension_numbers = #tpu.dot_dimension_numbers<[1], [0], [0], [1], [0, 0, 1, 1], [], []>} : vector<8x16xbf16>, vector<16x128xbf16>, vector<8x128xf32> -> vector<8x128xf32>
    %c0_3 = arith.constant 0 : index
    %c0_4 = arith.constant 0 : index
    %4 = vector.load %arg3[%c0_3, %c0_4] : memref<1x128xf32, #tpu.memory_space<vmem>>, vector<1x128xf32>
    %5 = vector.broadcast %4 : vector<1x128xf32> to vector<8x128xf32>
    %6 = arith.addf %3, %5 : vector<8x128xf32>
    %cst_5 = arith.constant 0.000000e+00 : f32
    %7 = vector.broadcast %cst_5 : f32 to vector<8x128xf32>
    %8 = arith.maximumf %6, %7 : vector<8x128xf32>
    %9 = arith.truncf %8 : vector<8x128xf32> to vector<8x128xbf16>
    %c0_6 = arith.constant 0 : index
    %c0_7 = arith.constant 0 : index
    %10 = vector.load %arg4[%c0_6, %c0_7] : memref<128x128xbf16, #tpu.memory_space<vmem>>, vector<128x128xbf16>
    %cst_8 = arith.constant dense<0.000000e+00> : vector<8x128xf32>
    %11 = tpu.matmul %9, %10, %cst_8 {dimension_numbers = #tpu.dot_dimension_numbers<[1], [0], [0], [1], [0, 0, 1, 1], [], []>} : vector<8x128xbf16>, vector<128x128xbf16>, vector<8x128xf32> -> vector<8x128xf32>
    %c0_9 = arith.constant 0 : index
    %c0_10 = arith.constant 0 : index
    %12 = vector.load %arg5[%c0_9, %c0_10] : memref<1x128xf32, #tpu.memory_space<vmem>>, vector<1x128xf32>
    %13 = vector.broadcast %12 : vector<1x128xf32> to vector<8x128xf32>
    %14 = arith.addf %11, %13 : vector<8x128xf32>
    %cst_11 = arith.constant 0.000000e+00 : f32
    %15 = vector.broadcast %cst_11 : f32 to vector<8x128xf32>
    %16 = arith.maximumf %14, %15 : vector<8x128xf32>
    %17 = arith.truncf %16 : vector<8x128xf32> to vector<8x128xbf16>
    %c0_12 = arith.constant 0 : index
    %c0_13 = arith.constant 0 : index
    %18 = vector.load %arg6[%c0_12, %c0_13] : memref<128x256xbf16, #tpu.memory_space<vmem>>, vector<128x256xbf16>
    %cst_14 = arith.constant dense<0.000000e+00> : vector<8x256xf32>
    %19 = tpu.matmul %17, %18, %cst_14 {dimension_numbers = #tpu.dot_dimension_numbers<[1], [0], [0], [1], [0, 0, 1, 1], [], []>} : vector<8x128xbf16>, vector<128x256xbf16>, vector<8x256xf32> -> vector<8x256xf32>
    %c0_15 = arith.constant 0 : index
    %c0_16 = arith.constant 0 : index
    %20 = vector.load %arg7[%c0_15, %c0_16] : memref<1x256xf32, #tpu.memory_space<vmem>>, vector<1x256xf32>
    %21 = vector.broadcast %20 : vector<1x256xf32> to vector<8x256xf32>
    %22 = arith.addf %19, %21 : vector<8x256xf32>
    %cst_17 = arith.constant 0.000000e+00 : f32
    %23 = vector.broadcast %cst_17 : f32 to vector<8x256xf32>
    %24 = arith.maximumf %22, %23 : vector<8x256xf32>
    %25 = arith.truncf %24 : vector<8x256xf32> to vector<8x256xbf16>
    %c0_18 = arith.constant 0 : index
    %c0_19 = arith.constant 0 : index
    %26 = vector.load %arg8[%c0_18, %c0_19] : memref<256x128xbf16, #tpu.memory_space<vmem>>, vector<256x128xbf16>
    %cst_20 = arith.constant dense<0.000000e+00> : vector<8x128xf32>
    %27 = tpu.matmul %25, %26, %cst_20 {dimension_numbers = #tpu.dot_dimension_numbers<[1], [0], [0], [1], [0, 0, 1, 1], [], []>} : vector<8x256xbf16>, vector<256x128xbf16>, vector<8x128xf32> -> vector<8x128xf32>
    %c0_21 = arith.constant 0 : index
    %c0_22 = arith.constant 0 : index
    %28 = vector.load %arg9[%c0_21, %c0_22] : memref<1x128xf32, #tpu.memory_space<vmem>>, vector<1x128xf32>
    %29 = vector.broadcast %28 : vector<1x128xf32> to vector<8x128xf32>
    %30 = arith.addf %27, %29 : vector<8x128xf32>
    %cst_23 = arith.constant dense<0xFF800000> : vector<8xf32>
    %31 = vector.multi_reduction <maximumf>, %30, %cst_23 [1] : vector<8x128xf32> to vector<8xf32>
    %32 = vector.shape_cast %31 : vector<8xf32> to vector<8x1xf32>
    %33 = vector.broadcast %32 : vector<8x1xf32> to vector<8x128xf32>
    %34 = arith.subf %30, %33 : vector<8x128xf32>
    %35 = math.exp %34 : vector<8x128xf32>
    %cst_24 = arith.constant dense<0.000000e+00> : vector<8xf32>
    %36 = vector.multi_reduction <add>, %35, %cst_24 [1] : vector<8x128xf32> to vector<8xf32>
    %37 = vector.shape_cast %36 : vector<8xf32> to vector<8x1xf32>
    %38 = vector.broadcast %37 : vector<8x1xf32> to vector<8x128xf32>
    %39 = arith.divf %35, %38 : vector<8x128xf32>
    %40 = vector.extract_strided_slice %39 {offsets = [0, 0], sizes = [8, 8], strides = [1, 1]} : vector<8x128xf32> to vector<8x8xf32>
    %c0_25 = arith.constant 0 : index
    %c0_26 = arith.constant 0 : index
    %41 = vector.load %arg10[%c0_25, %c0_26] : memref<8x8xf32, #tpu.memory_space<vmem>>, vector<8x8xf32>
    tpu.vector_store %arg10[%c0_25, %c0_26], %40 {strides = array<i32>} : memref<8x8xf32, #tpu.memory_space<vmem>>, vector<8x8xf32>,
    return
  }
  func.func @transform_0(%arg0: i32) -> (i32, i32) {
    %c0_i32 = arith.constant 0 : i32
    %c0_i32_0 = arith.constant 0 : i32
    return %arg0, %c0_i32 : i32, i32
  }
  func.func @transform_1(%arg0: i32) -> (i32, i32) {
    %c0_i32 = arith.constant 0 : i32
    %c0_i32_0 = arith.constant 0 : i32
    %c0_i32_1 = arith.constant 0 : i32
    return %c0_i32, %c0_i32_0 : i32, i32
  }
  func.func @transform_2(%arg0: i32) -> (i32, i32) {
    %c0_i32 = arith.constant 0 : i32
    %c0_i32_0 = arith.constant 0 : i32
    %c0_i32_1 = arith.constant 0 : i32
    return %c0_i32, %c0_i32_0 : i32, i32
  }
  func.func @transform_3(%arg0: i32) -> (i32, i32) {
    %c0_i32 = arith.constant 0 : i32
    %c0_i32_0 = arith.constant 0 : i32
    %c0_i32_1 = arith.constant 0 : i32
    return %c0_i32, %c0_i32_0 : i32, i32
  }
  func.func @transform_4(%arg0: i32) -> (i32, i32) {
    %c0_i32 = arith.constant 0 : i32
    %c0_i32_0 = arith.constant 0 : i32
    %c0_i32_1 = arith.constant 0 : i32
    return %c0_i32, %c0_i32_0 : i32, i32
  }
  func.func @transform_5(%arg0: i32) -> (i32, i32) {
    %c0_i32 = arith.constant 0 : i32
    %c0_i32_0 = arith.constant 0 : i32
    %c0_i32_1 = arith.constant 0 : i32
    return %c0_i32, %c0_i32_0 : i32, i32
  }
  func.func @transform_6(%arg0: i32) -> (i32, i32) {
    %c0_i32 = arith.constant 0 : i32
    %c0_i32_0 = arith.constant 0 : i32
    %c0_i32_1 = arith.constant 0 : i32
    return %c0_i32, %c0_i32_0 : i32, i32
  }
  func.func @transform_7(%arg0: i32) -> (i32, i32) {
    %c0_i32 = arith.constant 0 : i32
    %c0_i32_0 = arith.constant 0 : i32
    %c0_i32_1 = arith.constant 0 : i32
    return %c0_i32, %c0_i32_0 : i32, i32
  }
  func.func @transform_8(%arg0: i32) -> (i32, i32) {
    %c0_i32 = arith.constant 0 : i32
    %c0_i32_0 = arith.constant 0 : i32
    %c0_i32_1 = arith.constant 0 : i32
    return %c0_i32, %c0_i32_0 : i32, i32
  }
  func.func @transform_9(%arg0: i32) -> (i32, i32) {
    %c0_i32 = arith.constant 0 : i32
    %c0_i32_0 = arith.constant 0 : i32
    return %arg0, %c0_i32 : i32, i32
  }
}

</mosaic_0001>

<bundles_post_ra>
// kernel: tpu_custom_call.1
= control target key start
LH: loop header
LB: loop body
LE: loop exit
PB: predicated region body
PF: predicated region fallthrough
CT: control target
= control target key end

     0   :  { %14 = vsyncpa [#allocation3], 0  ;;  %s1112_s0 = inlined_call_operand.hbm [shape: f32[2,16], index: 0, kind: input, shape index: {}]   ;;  %s1113_s1 = inlined_call_operand.hbm [shape: bf16[16,128], index: 1, kind: input, shape index: {}]   ;;  %s1114_s2 = inlined_call_operand.vmem [shape: f32[1,128], index: 2, kind: input, shape index: {}]   ;;  %s1115_s3 = inlined_call_operand.hbm [shape: bf16[128,128], index: 3, kind: input, shape index: {}]   ;;  %s1116_s4 = inlined_call_operand.vmem [shape: f32[1,128], index: 4, kind: input, shape index: {}]   ;;  %s1117_s5 = inlined_call_operand.hbm [shape: bf16[128,256], index: 5, kind: input, shape index: {}]   ;;  %s1118_s6 = inlined_call_operand.vmem [shape: f32[1,256], index: 6, kind: input, shape index: {}]   ;;  %s1119_s7 = inlined_call_operand.hbm [shape: bf16[256,128], index: 7, kind: input, shape index: {}]   ;;  %s1120_s8 = inlined_call_operand.vmem [shape: f32[1,128], index: 8, kind: input, shape index: {}]   ;;  %s1121_s9 = inlined_call_operand.hbm [shape: f32[2,8], index: 9, kind: output, shape index: {}]  }
   0x1   :  { %15 = vsyncpa [#allocation6], 0 }
   0x2   :  { %16 = vsyncpa [#allocation9], 0 }
   0x3   :  { %17 = vsyncpa [#allocation4], 0 }
   0x4   :  { %22 = vsyncadd [#allocation3], 96  ;;  %s948_s30 = smov [#allocation5]   ;;  %s808_s13 = scalar_lea.hbm %s1113_s1, 128 }
   0x5   :  { %s35_s10 = sshll.u32 %s948_s30, 4  ;;  %p809_p0 = scmp.ne.s32.totalorder %s1113_s1, %s808_s13  ;;  %s36_s10 = int_to_ptr.vmem [resolvable:$true] %s35_s10 }
   0x6   :  { %p812_p1 = scmp.lt.u32.totalorder %s808_s13, %s1113_s1 }
   0x8   :  { %p814_p2 = pnand %p812_p1, %p809_p0 }
   0xa   :  { %817 = shalt.err (!%p814_p2)
}
   0xb   :  { %s818_s18 = scalar_lea.vmem %s36_s10, 128  ;;  %p823_p4 = scmp.lt.s32.totalorder %s36_s10, %s36_s10 }
   0xc   :  { %p819_p3 = scmp.ne.s32.totalorder %s36_s10, %s818_s18  ;;  %p824_p5 = scmp.lt.s32.totalorder %s818_s18, %s818_s18 }
   0xe   :  { %p825_p6 = por %p824_p5, %p823_p4 }
  0x10   :  { %p826_p7 = pnand %p825_p6, %p819_p3 }
  0x12   :  { %829 = shalt.err (!%p826_p7)
}
  0x13   :  { %s949_s19 = smov 64   ;;  %s950_s20 = smov 4  }
  0x14   :  { %41 = dma.hbm_to_vmem [thread:$0]  %s1113_s1, 128, %s36_s10, [#allocation6], %s949_s19, %s949_s19, %s950_s20  }
  0x15   :  { %s951_s23 = smov [#allocation8]   ;;  %s830_s27 = scalar_lea.hbm %s1117_s5, 2048 }
  0x16   :  { %s63_s24 = sshll.u32 %s951_s23, 4  ;;  %p831_p8 = scmp.ne.s32.totalorder %s1117_s5, %s830_s27  ;;  %s64_s24 = int_to_ptr.vmem [resolvable:$true] %s63_s24 }
  0x17   :  { %p834_p9 = scmp.lt.u32.totalorder %s830_s27, %s1117_s5 }
  0x19   :  { %p836_p10 = pnand %p834_p9, %p831_p8 }
  0x1b   :  { %839 = shalt.err (!%p836_p10)
}
  0x1c   :  { %s840_s12 = scalar_lea.vmem %s64_s24, 2048  ;;  %p845_p12 = scmp.lt.s32.totalorder %s64_s24, %s64_s24 }
  0x1d   :  { %p841_p11 = scmp.ne.s32.totalorder %s64_s24, %s840_s12  ;;  %p846_p13 = scmp.lt.s32.totalorder %s840_s12, %s840_s12 }
  0x1f   :  { %p847_p0 = por %p846_p13, %p845_p12 }
  0x21   :  { %p848_p1 = pnand %p847_p0, %p841_p11 }
  0x23   :  { %851 = shalt.err (!%p848_p1)
}
  0x24   :  { %s952_s1 = smov 128   ;;  %s953_s10 = smov 8  }
  0x25   :  { %69 = dma.hbm_to_vmem [thread:$0]  %s1117_s5, 2048, %s64_s24, [#allocation9], %s952_s1, %s952_s1, %s953_s10  }
  0x26   :  { %s954_s15 = smov [#allocation2]   ;;  %s852_s21 = scalar_lea.hbm %s1112_s0, 32 }
  0x27   :  { %s23_s16 = sshll.u32 %s954_s15, 4  ;;  %p853_p2 = scmp.ne.s32.totalorder %s1112_s0, %s852_s21  ;;  %s24_s16 = int_to_ptr.vmem [resolvable:$true] %s23_s16 }
  0x28   :  { %p856_p3 = scmp.lt.u32.totalorder %s852_s21, %s1112_s0 }
  0x2a   :  { %p858_p4 = pnand %p856_p3, %p853_p2 }
  0x2c   :  { %861 = shalt.err (!%p858_p4)
}
  0x2d   :  { %s862_s27 = scalar_lea.vmem %s24_s16, 32  ;;  %s866_s5 = scalar_lea.vmem %s24_s16, 128 }
  0x2e   :  { %p863_p5 = scmp.ne.s32.totalorder %s24_s16, %s862_s27  ;;  %p867_p6 = scmp.lt.s32.totalorder %s24_s16, %s24_s16 }
  0x2f   :  { %p868_p7 = scmp.lt.s32.totalorder %s866_s5, %s862_s27 }
  0x31   :  { %p869_p8 = por %p868_p7, %p867_p6 }
  0x33   :  { %p870_p9 = pnand %p869_p8, %p863_p5 }
  0x35   :  { %873 = shalt.err (!%p870_p9)
}
  0x36   :  { %s955_s24 = smov 32   ;;  %s956_s28 = smov 2  }
  0x37   :  { %29 = dma.hbm_to_vmem [thread:$0]  %s1112_s0, 32, %s24_s16, [#allocation3], %s955_s24, %s955_s24, %s956_s28  }
  0x38   :  { %s957_s11 = smov [#allocation7]   ;;  %s958_s1 = smov [#allocation10]  }
  0x39   :  { %s49_s12 = sshll.u32 %s957_s11, 4  ;;  %s77_s10 = sshll.u32 %s958_s1, 4  ;;  %s50_s12 = int_to_ptr.vmem [resolvable:$true] %s49_s12  ;;  %s78_s10 = int_to_ptr.vmem [resolvable:$true] %s77_s10 }
  0x3a   :  { %s874_s15 = scalar_lea.hbm %s1115_s3, 1024 }
  0x3b   :  { %p875_p10 = scmp.ne.s32.totalorder %s1115_s3, %s874_s15  ;;  %p878_p11 = scmp.lt.u32.totalorder %s874_s15, %s1115_s3 }
  0x3d   :  { %p880_p12 = pnand %p878_p11, %p875_p10 }
  0x3f   :  { %883 = shalt.err (!%p880_p12)
}
  0x40   :  { %s884_s0 = scalar_lea.vmem %s50_s12, 1024  ;;  %p889_p0 = scmp.lt.s32.totalorder %s50_s12, %s50_s12 }
  0x41   :  { %p885_p13 = scmp.ne.s32.totalorder %s50_s12, %s884_s0  ;;  %p890_p1 = scmp.lt.s32.totalorder %s884_s0, %s884_s0 }
  0x43   :  { %p891_p2 = por %p890_p1, %p889_p0 }
  0x45   :  { %p892_p3 = pnand %p891_p2, %p885_p13 }
  0x47   :  { %895 = shalt.err (!%p892_p3)
}
  0x48   :  { %55 = dma.hbm_to_vmem [thread:$0]  %s1115_s3, 1024, %s50_s12, [#allocation6], %s949_s19, %s949_s19, %s950_s20  }
  0x49   :  { %s896_s27 = scalar_lea.hbm %s1119_s7, 2048 }
  0x4a   :  { %p897_p4 = scmp.ne.s32.totalorder %s1119_s7, %s896_s27  ;;  %p900_p5 = scmp.lt.u32.totalorder %s896_s27, %s1119_s7 }
  0x4c   :  { %p902_p6 = pnand %p900_p5, %p897_p4 }
  0x4e   :  { %905 = shalt.err (!%p902_p6)
}
  0x4f   :  { %s906_s1 = scalar_lea.vmem %s78_s10, 2048  ;;  %p911_p8 = scmp.lt.s32.totalorder %s78_s10, %s78_s10 }
  0x50   :  { %p907_p7 = scmp.ne.s32.totalorder %s78_s10, %s906_s1  ;;  %p912_p9 = scmp.lt.s32.totalorder %s906_s1, %s906_s1 }
  0x52   :  { %p913_p10 = por %p912_p9, %p911_p8 }
  0x54   :  { %p914_p11 = pnand %p913_p10, %p907_p7 }
  0x56   :  { %917 = shalt.err (!%p914_p11)
}
  0x57   :  { %83 = dma.hbm_to_vmem [thread:$0]  %s1119_s7, 2048, %s78_s10, [#allocation9], %s949_s19, %s949_s19, %s950_s20  }
  0x58   :  { %940 = dma.done.wait [#allocation3], 128  }
  0x59   :  { %941 = vsyncadd [#allocation3], 4294967168 }
  0x5a   :  { %942 = dma.done.wait [#allocation6], 1152  }
  0x5b   :  { %943 = vsyncadd [#allocation6], 4294966144 }
  0x5c   :  { %944 = dma.done.wait [#allocation9], 4096  }
  0x5d   :  { %945 = vsyncadd [#allocation9], 4294963200  ;;  %v959_v0 = vmov 0.0   ;;  %vm960_vm0 = vmmov 0   ;;  %v755_v1 = vld [vmem:[#allocation5] sm:$0xff]   ;;  %v102_v2 = vld [vmem:[#allocation2] sm:$0xff]  ;;  %v296_v61 = vlaneseq }
  0x5e   :  { %714 = vmatprep.subr.bf16.mxu0 %v959_v0  ;;  %716 = vmatprep.mubr.msk.bf16.mxu0 %vm960_vm0, %v959_v0  ;;  %v103_v3 = vpack.c.bf16 %v102_v2, %v102_v2  ;;  %vm119_vm1 = vcmask 130048   ;;  %v756_v4 = vld [vmem:[#allocation7] sm:$0xff]   ;;  %v757_v5 = vld [vmem:[#allocation7 + $0x8] sm:$0xff]   ;;  %v758_v6 = vld [vmem:[#allocation7 + $0x10] sm:$0xff]   ;;  %v961_v36 = vmov 0   ;;  %vm615_vm2 = vcmask 64512  }
  0x5f   :  { %720 = vmatprep.subr.bf16.mxu1 %v959_v0  ;;  %736 = vmatprep.mubr.msk.bf16.mxu1 %vm960_vm0, %v959_v0  ;;  %v759_v7 = vld [vmem:[#allocation7 + $0x18] sm:$0xff]   ;;  %v760_v8 = vld [vmem:[#allocation7 + $0x20] sm:$0xff]   ;;  %v761_v9 = vld [vmem:[#allocation7 + $0x28] sm:$0xff]   ;;  %v297_v62 = vshrl.u32 %v296_v61, 7 }
  0x60   :  { %715 = vmatpush3.bf16.msra.mxu0 %v755_v1  ;;  %721 = vmatpush3.bf16.msra.mxu1 %v756_v4  ;;  %v762_v10 = vld [vmem:[#allocation7 + $0x30] sm:$0xff]   ;;  %v763_v11 = vld [vmem:[#allocation7 + $0x38] sm:$0xff]   ;;  %v764_v12 = vld [vmem:[#allocation8] ss:$8 sps:$4 sm:$0xff]  }
  0x61   :  { %722 = vmatprep.subr.bf16.mxu1 %v959_v0  ;;  %v766_v13 = vld [vmem:[#allocation8 + $0x4] ss:$8 sps:$4 sm:$0xff]   ;;  %v769_v14 = vld [vmem:[#allocation8 + $0x14] ss:$8 sps:$4 sm:$0xff]   ;;  %v767_v15 = vld [vmem:[#allocation8 + $0x10] ss:$8 sps:$4 sm:$0xff]  }
  0x62   :  { %386 = vmatprep.subr.bf16.mxu0 %v766_v13  ;;  %v772_v16 = vld [vmem:[#allocation8 + $0x24] ss:$8 sps:$4 sm:$0xff]   ;;  %v770_v17 = vld [vmem:[#allocation8 + $0x20] ss:$8 sps:$4 sm:$0xff]   ;;  %v775_v18 = vld [vmem:[#allocation8 + $0x34] ss:$8 sps:$4 sm:$0xff]  }
  0x63   :  { %717 = vmatmul.mubr.msk.bf16.vlgmr.msra.gmra.mrb[0].mxu0 %vm119_vm1, %v103_v3  ;;  %v773_v19 = vld [vmem:[#allocation8 + $0x30] ss:$8 sps:$4 sm:$0xff]   ;;  %v778_v20 = vld [vmem:[#allocation8 + $0x44] ss:$8 sps:$4 sm:$0xff]   ;;  %v776_v21 = vld [vmem:[#allocation8 + $0x40] ss:$8 sps:$4 sm:$0xff]  }
  0x64   :  { %723 = vmatpush3.bf16.msra.mxu1 %v757_v5  ;;  %387 = vmatpush1.bf16.msra.mxu0 %v764_v12  ;;  %v781_v22 = vld [vmem:[#allocation8 + $0x54] ss:$8 sps:$4 sm:$0xff]   ;;  %v779_v23 = vld [vmem:[#allocation8 + $0x50] ss:$8 sps:$4 sm:$0xff]   ;;  %v784_v24 = vld [vmem:[#allocation8 + $0x64] ss:$8 sps:$4 sm:$0xff]  }
  0x65   :  { %724 = vmatprep.subr.bf16.mxu1 %v959_v0  ;;  %388 = vmatprep.subr.bf16.mxu0 %v769_v14  ;;  %v782_v25 = vld [vmem:[#allocation8 + $0x60] ss:$8 sps:$4 sm:$0xff]   ;;  %v636_v26 = vld [vmem:[%s1114_s2] ss:$0 sm:$0xff]  ;;  %v787_v34 = vld [vmem:[#allocation8 + $0x74] ss:$8 sps:$4 sm:$0xff]  }
  0x66   :  { %v785_v35 = vld [vmem:[#allocation8 + $0x70] ss:$8 sps:$4 sm:$0xff]   ;;  %418 = vmatprep.mubr.bf16.mxu0 %v961_v36  ;;  %v788_v37 = vld [vmem:[#allocation10 + $0x40] sm:$0xff]   ;;  %v790_v39 = vld [vmem:[#allocation10 + $0x48] sm:$0xff]   ;;  %v298_v63 = vsub.s32 0, %v297_v62  ;;  %v302_v1 = vsub.s32 1, %v297_v62 }
  0x67   :  { %v789_v38 = vld [vmem:[#allocation10] sm:$0xff]   ;;  %v791_v40 = vld [vmem:[#allocation10 + $0x8] sm:$0xff]   ;;  %v792_v41 = vld [vmem:[#allocation10 + $0x50] sm:$0xff]  }
  0x68   :  { %725 = vmatpush3.bf16.msra.mxu1 %v758_v6  ;;  %389 = vmatpush1.bf16.msra.mxu0 %v767_v15  ;;  %v793_v42 = vld [vmem:[#allocation10 + $0x10] sm:$0xff]   ;;  %v794_v43 = vld [vmem:[#allocation10 + $0x58] sm:$0xff]   ;;  %v796_v45 = vld [vmem:[#allocation10 + $0x60] sm:$0xff]  }
  0x69   :  { %726 = vmatprep.subr.bf16.mxu1 %v959_v0  ;;  %390 = vmatprep.subr.bf16.mxu0 %v772_v16  ;;  %v795_v44 = vld [vmem:[#allocation10 + $0x18] sm:$0xff]   ;;  %v797_v46 = vld [vmem:[#allocation10 + $0x20] sm:$0xff]   ;;  %v798_v47 = vld [vmem:[#allocation10 + $0x68] sm:$0xff]  }
  0x6a   :  { %v799_v48 = vld [vmem:[#allocation10 + $0x28] sm:$0xff]   ;;  %v639_v49 = vld [vmem:[%s1116_s4] ss:$0 sm:$0xff]  ;;  %v802_v59 = vld [vmem:[#allocation10 + $0x78] sm:$0xff]  }
  0x6b   :  { %v800_v57 = vld [vmem:[#allocation10 + $0x70] sm:$0xff]   ;;  %v803_v60 = vld [vmem:[#allocation10 + $0x38] sm:$0xff]  }
  0x6c   :  { %727 = vmatpush3.bf16.msra.mxu1 %v759_v7  ;;  %391 = vmatpush1.bf16.msra.mxu0 %v770_v17  ;;  %v801_v58 = vld [vmem:[#allocation10 + $0x30] sm:$0xff]  }
  0x6d   :  { %728 = vmatprep.subr.bf16.mxu1 %v959_v0  ;;  %392 = vmatprep.subr.bf16.mxu0 %v775_v18  ;;  %v664_v16 = vld [vmem:[%s1120_s8] ss:$0 sm:$0xff] }
  0x70   :  { %729 = vmatpush3.bf16.msra.mxu1 %v760_v8  ;;  %393 = vmatpush1.bf16.msra.mxu0 %v773_v19 }
  0x71   :  { %730 = vmatprep.subr.bf16.mxu1 %v959_v0  ;;  %394 = vmatprep.subr.bf16.mxu0 %v778_v20 }
  0x74   :  { %731 = vmatpush3.bf16.msra.mxu1 %v761_v9  ;;  %395 = vmatpush1.bf16.msra.mxu0 %v776_v21 }
  0x75   :  { %732 = vmatprep.subr.bf16.mxu1 %v959_v0  ;;  %396 = vmatprep.subr.bf16.mxu0 %v781_v22 }
  0x78   :  { %733 = vmatpush3.bf16.msra.mxu1 %v762_v10  ;;  %397 = vmatpush1.bf16.msra.mxu0 %v779_v23 }
  0x79   :  { %734 = vmatprep.subr.bf16.mxu1 %v959_v0  ;;  %398 = vmatprep.subr.bf16.mxu0 %v784_v24  ;;  %v294_v0 = vld [vmem:[%s1118_s6] sm:$0x3] }
  0x7a   :  { %v299_v2 = vrot.slane %v294_v0, %v298_v63  ;;  %v303_v3 = vrot.slane %v294_v0, %v302_v1 }
  0x7c   :  { %735 = vmatpush3.bf16.msra.mxu1 %v763_v11  ;;  %399 = vmatpush1.bf16.msra.mxu0 %v782_v25 }
  0x7d   :  { %400 = vmatprep.subr.bf16.mxu0 %v787_v34  ;;  %692 = vmatprep.subr.bf16.mxu1 %v788_v37 }
  0x80   :  { %401 = vmatpush1.bf16.msra.mxu0 %v785_v35 }
 0x136   :  { %v157_v27 = vpop.f32.mrb[0].mxu0 }
 0x137   :  { %v158_v28 = vadd.f32 %v636_v26, %v157_v27  ;;  %v718_v29 = vpop.f32.mrb[1].mxu0 }
 0x138   :  { %v160_v30 = vpop.f32.mrb[2].mxu0 }
 0x139   :  { %v163_v31 = vmax.f32 %v158_v28, 0.0  ;;  %v719_v32 = vpop.f32.mrb[3].mxu0 }
 0x13b   :  { %v164_v33 = vpack.c.bf16 %v163_v31, %v163_v31 }
 0x13d   :  { %737 = vmatmul.mubr.bf16.vlgmr.msra.gmra.mrb[0].mxu1 %v164_v33 }
 0x13e   :  { %693 = vmatpush3.bf16.msra.mxu1 %v789_v38 }
 0x13f   :  { %694 = vmatprep.subr.bf16.mxu1 %v790_v39 }
 0x142   :  { %695 = vmatpush3.bf16.msra.mxu1 %v791_v40 }
 0x143   :  { %696 = vmatprep.subr.bf16.mxu1 %v792_v41 }
 0x146   :  { %697 = vmatpush3.bf16.msra.mxu1 %v793_v42 }
 0x147   :  { %698 = vmatprep.subr.bf16.mxu1 %v794_v43 }
 0x14a   :  { %699 = vmatpush3.bf16.msra.mxu1 %v795_v44 }
 0x14b   :  { %700 = vmatprep.subr.bf16.mxu1 %v796_v45 }
 0x14e   :  { %701 = vmatpush3.bf16.msra.mxu1 %v797_v46 }
 0x14f   :  { %702 = vmatprep.subr.bf16.mxu1 %v798_v47 }
 0x152   :  { %703 = vmatpush3.bf16.msra.mxu1 %v799_v48 }
 0x153   :  { %704 = vmatprep.subr.bf16.mxu1 %v800_v57 }
 0x156   :  { %705 = vmatpush3.bf16.msra.mxu1 %v801_v58 }
 0x157   :  { %706 = vmatprep.subr.bf16.mxu1 %v802_v59 }
 0x15a   :  { %707 = vmatpush3.bf16.msra.mxu1 %v803_v60 }
 0x210   :  { %v270_v50 = vpop.f32.mrb[0].mxu1 }
 0x211   :  { %v271_v51 = vadd.f32 %v639_v49, %v270_v50  ;;  %v738_v52 = vpop.f32.mrb[1].mxu1 }
 0x212   :  { %v273_v53 = vpop.f32.mrb[2].mxu1 }
 0x213   :  { %v276_v54 = vmax.f32 %v271_v51, 0.0  ;;  %v739_v55 = vpop.f32.mrb[3].mxu1 }
 0x215   :  { %v277_v56 = vpack.c.bf16 %v276_v54, %v276_v54 }
 0x217   :  { %419 = vmatmul.mubr.bf16.vlgmr.msra.gmra.mrb[4].mxu0 %v277_v56 }
 0x2ea   :  { %v420_v4 = vpop.f32.mrb[4].mxu0 }
 0x2eb   :  { %v421_v5 = vadd.f32 %v420_v4, %v299_v2  ;;  %v422_v6 = vpop.f32.mrb[5].mxu0 }
 0x2ec   :  { %v423_v7 = vadd.f32 %v422_v6, %v303_v3  ;;  %v424_v8 = vpop.f32.mrb[6].mxu0 }
 0x2ed   :  { %v427_v9 = vmax.f32 %v421_v5, 0.0  ;;  %v425_v10 = vpop.f32.mrb[7].mxu0 }
 0x2ee   :  { %v428_v11 = vmax.f32 %v423_v7, 0.0 }
 0x2ef   :  { %v429_v13 = vpack.c.bf16 %v427_v9, %v427_v9 }
 0x2f0   :  { %v430_v12 = vpack.c.bf16 %v428_v11, %v428_v11 }
 0x2f2   :  { %598 = vmatprep.mubr.bf16.mxu1 %v430_v12 }
 0x2f3   :  { %599 = vmatmul.mubr.bf16.vlgmr.msra.gmra.mrb[4].mxu1 %v429_v13 }
 0x3c6   :  { %v708_v14 = vpop.f32.mrb[4].mxu1 }
 0x3c7   :  { %v709_v15 = vpop.f32.mrb[5].mxu1 }
 0x3c8   :  { %v710_v17 = vadd.f32 %v709_v15, %v708_v14  ;;  %v711_v18 = vpop.f32.mrb[6].mxu1 }
 0x3c9   :  { %v712_v19 = vpop.f32.mrb[7].mxu1 }
 0x3ca   :  { %v601_v20 = vadd.f32 %v710_v17, %v664_v16 }
 0x3cc   :  { %606 = vmax.xlane.f32.xlu0 %v601_v20 }
 0x459   :  { %v607_v21 = vpop.xlane.xlu0 %606 }
 0x45a   :  { %v608_v22 = vsub.f32 %v601_v20, %v607_v21 }
 0x45c   :  { %v609_v23 = vmul.f32 1.442695, %v608_v22 }
 0x45e   :  { %804 = vpow2.f32 %v609_v23 }
 0x468   :  { %v805_v24 = vpop.eup %804 }
 0x469   :  { %611 = vadd.xlane.f32.xlu0 %v805_v24 }
 0x4f6   :  { %v612_v25 = vpop.xlane.xlu0 %611 }
 0x4f7   :  { %806 = vrcp.f32 %v612_v25 }
 0x501   :  { %v807_v26 = vpop.eup %806 }
 0x502   :  { %v614_v27 = vmul.f32 %v807_v26, %v805_v24 }
 0x504   :  { %616 = vst.msk [vmem:[#allocation11] sm:$0xff] %vm615_vm2, %v614_v27 }
 0x505   :  { %621 = vsyncadd [#allocation4], 96  ;;  %s962_s6 = smov [#allocation11]  }
 0x506   :  { %s622_s8 = sshll.u32 %s962_s6, 4  ;;  %s623_s8 = int_to_ptr.vmem [resolvable:$true] %s622_s8 }
 0x507   :  { %s918_s15 = scalar_lea.vmem %s623_s8, 32  ;;  %s922_s17 = scalar_lea.vmem %s623_s8, 128 }
 0x508   :  { %p919_p12 = scmp.ne.s32.totalorder %s623_s8, %s918_s15  ;;  %p923_p13 = scmp.lt.s32.totalorder %s623_s8, %s623_s8 }
 0x509   :  { %p924_p0 = scmp.lt.s32.totalorder %s922_s17, %s918_s15 }
 0x50b   :  { %p925_p1 = por %p924_p0, %p923_p13 }
 0x50d   :  { %p926_p2 = pnand %p925_p1, %p919_p12 }
 0x50f   :  { %929 = shalt.err (!%p926_p2)
}
 0x510   :  { %s930_s22 = scalar_lea.hbm %s1121_s9, 32 }
 0x511   :  { %p931_p3 = scmp.ne.s32.totalorder %s1121_s9, %s930_s22  ;;  %p934_p4 = scmp.lt.u32.totalorder %s930_s22, %s1121_s9 }
 0x513   :  { %p936_p5 = pnand %p934_p4, %p931_p3 }
 0x515   :  { %939 = shalt.err (!%p936_p5)
}
 0x516   :  { %628 = dma.vmem_to_hbm [thread:$0]  %s623_s8, 32, %s1121_s9, [#allocation4], %s955_s24, %s955_s24, %s956_s28  }
 0x517   :  { %946 = dma.done.wait [#allocation4], 128  }
 0x518   :  { %947 = vsyncadd [#allocation4], 4294967168 }
 0x519   :  { %632 = vsyncpa [#allocation3], 1 }
 0x51a   :  { %633 = vsyncpa [#allocation6], 1 }
 0x51b   :  { %634 = vsyncpa [#allocation9], 1 }
 0x51c   :  { %635 = vsyncpa [#allocation4], 1 }

</bundles_post_ra>
